<compile_context>
chip_gen: v5e
topology: v5e:2x2
jax: 0.10.0
libtpu: 0.0.40
codegen_flags: <defaults>
</compile_context>

<pallas_src>
import numpy as np
import jax
import jax.numpy as jnp
from jax.experimental import pallas as pl
from jax.experimental.pallas import tpu as pltpu

# db1 (Haar) analysis filters (pywt.Wavelet('db1').dec_lo / dec_hi).
DEC_LO = np.array([0.7071067811865476, 0.7071067811865476], dtype=np.float32)
DEC_HI = np.array([-0.7071067811865476, 0.7071067811865476], dtype=np.float32)

_MIN_GRID_STEPS = 8      # keep the pipeline + both v7x TensorCores busy
_TMP_F32_COPIES = 6      # conservative in-kernel f32 working-set multiplier


def _vmem_limits():
    """Return (per-step VMEM byte budget, vmem_limit_bytes for CompilerParams)."""
    cap = None
    try:
        cap = getattr(pltpu.get_tpu_info(), "vmem_capacity_bytes", None)
    except Exception:
        cap = None
    if not cap:
        cap = 64 << 20                        # conservative (v7x-sized) default
    # <= ~48 MiB scoped on 64 MiB parts (v7x), <= ~96 MiB on 128 MiB parts.
    limit = int(min((cap * 3) // 4, 96 << 20))
    budget = (limit * 3) // 5                 # headroom for Mosaic internals
    return budget, limit


def _step_bytes(p_blk, th, halo, W, in_item, out_item):
    """Estimated per-grid-step VMEM: double-buffered I/O + f32 temporaries."""
    io = p_blk * W * ((th + halo) * in_item + 4 * th * out_item)
    tmp = _TMP_F32_COPIES * p_blk * (th + halo) * W * 4
    return 2 * io + tmp


def _choose_tiling(P, H, W, dilation, in_item, out_item, budget):
    """Pick (planes_per_step, row_tile, halo_rows) for one level.

    halo_rows == 0 selects the tiny-H path (no halo input; periodic wrap via
    in-kernel self-concat).  Otherwise the kernel gets a `halo_rows` wrap
    block: the first rows of the next row tile (or of the plane itself when
    the whole plane is resident).
    """
    halo = max(8, ((dilation + 7) // 8) * 8)      # multiple of 8, >= dilation

    if halo > H:
        # H < 8: whole (tiny) plane resident, wrap handled in-kernel, no OOB.
        divisors = [q for q in range(1, P + 1) if P % q == 0]
        fit = [q for q in divisors
               if _step_bytes(q, H, H, W, in_item, out_item) <= budget] or [1]
        good = [q for q in fit if P // q >= _MIN_GRID_STEPS]
        return (max(good) if good else min(fit)), H, 0

    # Candidate (planes_per_step, row_tile) pairs:
    #  * th == H with plane batching (wrap = first rows of the same plane),
    #  * one plane per step with th a multiple of `halo` dividing H (wrap =
    #    first rows of the next row tile -> the halo index map lands exactly
    #    on the next tile start).
    options = []
    for q in range(1, P + 1):
        if P % q == 0 and _step_bytes(q, H, halo, W, in_item, out_item) <= budget:
            options.append((q, H))
    for t in range(halo, H, halo):
        if H % t == 0 and _step_bytes(1, t, halo, W, in_item, out_item) <= budget:
            options.append((1, t))
    if not options:
        # TODO(synk): tile W (lane halo for the periodic W wrap) here.
        raise ValueError(
            f"SWT plane ({H}x{W}, dilation={dilation}) does not fit the "
            f"per-step VMEM budget ({budget} B) with full-W row tiles; "
            f"W tiling is not implemented.")

    def n_steps(o):
        return (P // o[0]) * (H // o[1])

    deep = [o for o in options if n_steps(o) >= _MIN_GRID_STEPS]
    if deep:
        # Biggest per-step work that still keeps the grid deep enough.
        p_blk, th = max(deep, key=lambda o: o[0] * o[1])
    else:
        # Tiny problem: maximize step count (pipelining) first.
        p_blk, th = max(options, key=lambda o: (n_steps(o), o[0] * o[1]))
    return p_blk, th, halo


def _make_kernel(d, th, halo, W):
    """One Haar analysis level; dilation / tile sizes are compile-time."""
    shift_w = (W - (d % W)) % W               # roll(+shift_w) == roll(-d)
    lane_dense = (W % 128 == 0)

    def _roll_w(a):
        if shift_w == 0:
            return a
        if lane_dense:
            # XLU lane rotate (free slot) for 128-aligned widths.
            return pltpu.roll(a, shift=shift_w, axis=a.ndim - 1)
        return jnp.roll(a, -d, axis=-1)

    def _analyse(xx, y_ref):
        # xx: (Pb, th + wrap_rows, W) f32, already scaled by 0.5
        # (0.7071^2 == 0.5 folded once into the input cast).
        odt = y_ref.dtype
        xw = _roll_w(xx)                       # xx[..., w + d] (periodic in W)
        s = xx + xw                            # row low-pass (unnormalized)
        s0, sd = s[:, :th], s[:, d:th + d]
        # Subband order matches the module's view(bs, c, 4, h, w):
        # 0: A (ll), 1: H (lh), 2: V (hl), 3: D (hh).  Store the two
        # low-row subbands before forming t -> smaller live f32 set.
        y_ref[:, 0] = (s0 + sd).astype(odt)
        y_ref[:, 1] = (s0 - sd).astype(odt)
        t = xx - xw                            # row high-pass
        t0, td = t[:, :th], t[:, d:th + d]
        y_ref[:, 2] = (t0 + td).astype(odt)
        y_ref[:, 3] = (t0 - td).astype(odt)

    if halo > 0:
        def kernel(x_ref, wrap_ref, y_ref):
            # x_ref: (Pb, th, W); wrap_ref: (Pb, halo, W) = first rows of the
            # next row tile (periodic wrap along H); only first d rows used.
            xx = jnp.concatenate([x_ref[...], wrap_ref[...]], axis=1)
            _analyse(xx.astype(jnp.float32) * 0.5, y_ref)
    else:
        def kernel(x_ref, y_ref):
            # Tiny-H path: the whole plane is resident; wrap = the plane itself.
            x = x_ref[...]
            xx = jnp.concatenate([x, x], axis=1)
            _analyse(xx.astype(jnp.float32) * 0.5, y_ref)
    return kernel


def _swt_level(src, dilation, out_dtype):
    """One afb2d_atrous level on flattened planes.

    `src` is either the (P, H, W) level-0 input or the previous level's
    (P, 4, H, W) output, whose subband 0 (LL) is read directly through the
    BlockSpec (subband dim squeezed) -- no dense LL copy between levels.
    Returns (P, 4, H, W) in `out_dtype`.
    """
    from_subband = src.ndim == 4
    if from_subband:
        P, _, H, W = src.shape
    else:
        P, H, W = src.shape
    assert dilation < H and dilation < W, (
        "dilation (2**level) must be smaller than the spatial dims")

    in_item = src.dtype.itemsize
    out_item = jnp.dtype(out_dtype).itemsize
    budget, vmem_limit = _vmem_limits()
    p_blk, th, halo = _choose_tiling(P, H, W, dilation, in_item, out_item,
                                     budget)
    n_p, n_h = P // p_blk, H // th
    if n_h > 1:
        # The wrap index map relies on row tiles being multiples of halo.
        assert th % halo == 0, (th, halo)
    stride = (th // halo) if (halo > 0 and th % halo == 0) else 0

    kernel = _make_kernel(dilation, th, halo, W)

    def _in_spec(rows, row_map):
        if from_subband:
            # Slice subband 0 (LL) of the previous level's output directly.
            return pl.BlockSpec((p_blk, pl.Squeezed(), rows, W),
                                lambda p, i: (p, 0, row_map(i), 0))
        return pl.BlockSpec((p_blk, rows, W),
                            lambda p, i: (p, row_map(i), 0))

    in_specs = [_in_spec(th, lambda i: i)]
    operands = (src,)
    if halo > 0:
        # Wrap block: first `halo` rows of the next row tile (wraps to row 0
        # when there is a single row tile).
        in_specs.append(_in_spec(halo, lambda i: ((i + 1) % n_h) * stride))
        operands = (src, src)

    out_shape = jax.ShapeDtypeStruct((P, 4, H, W), out_dtype)
    out_specs = pl.BlockSpec((p_blk, 4, th, W), lambda p, i: (p, 0, i, 0))

    halo_reads = P * n_h * halo * W * in_item if halo > 0 else 0
    cost = pl.CostEstimate(
        flops=int(11 * P * H * W),
        transcendentals=0,
        bytes_accessed=int(P * H * W * (in_item + 4 * out_item) + halo_reads))

    return pl.pallas_call(
        kernel,
        out_shape=out_shape,
        grid=(n_p, n_h),
        in_specs=in_specs,
        out_specs=out_specs,
        compiler_params=pltpu.CompilerParams(
            dimension_semantics=("parallel", "parallel"),
            vmem_limit_bytes=vmem_limit),
        cost_estimate=cost,
    )(*operands)


def swt_forward(x, J=1, out_dtype=None):
    """Equivalent of SWTForward(J, wave='db1', mode='periodic').forward(x).

    Returns a list of J arrays, each of shape (N, C, 4, H, W).

    `out_dtype` (e.g. jnp.bfloat16) is an opt-in knob that halves the dominant
    subband write traffic; the default keeps the input dtype (exact).
    """
    N, C, H, W = x.shape
    odt = x.dtype if out_dtype is None else jnp.dtype(out_dtype)
    src = x.reshape(N * C, H, W)          # free reshape; planes drive the grid
    coeffs = []
    for j in range(J):
        y = _swt_level(src, 2 ** j, odt)  # (P, 4, H, W)
        coeffs.append(y.reshape(N, C, 4, H, W))
        src = y   # next level reads subband 0 straight from y via its BlockSpec
    return coeffs


def swt_ref(x, J=1):
    """Pure-JAX reference (mirrors pytorch_wavelets afb2d_atrous, periodic)."""
    h0 = DEC_LO[::-1]
    h1 = DEC_HI[::-1]
    L = len(h0)
    coeffs = []
    ll = x
    for j in range(J):
        d = 2 ** j
        pad_b = (L * d) // 2 - d

        def filt(a, h, axis):
            out = jnp.zeros_like(a)
            n = a.shape[axis]
            for k in range(L):
                idx = (jnp.arange(n) + (k * d - pad_b)) % n
                out = out + float(h[k]) * jnp.take(a, idx, axis=axis)
            return out

        lo_r = filt(ll, h0, -1)
        hi_r = filt(ll, h1, -1)
        y = jnp.stack(
            [filt(lo_r, h0, -2), filt(lo_r, h1, -2),
             filt(hi_r, h0, -2), filt(hi_r, h1, -2)], axis=2)
        coeffs.append(y)
        ll = y[:, :, 0]
    return coeffs


if __name__ == "__main__":
    key = jax.random.PRNGKey(0)
    k1, k2 = jax.random.split(key)

    # Case 1: small square planes -> whole-plane path, grid = (8, 1).
    x1 = jax.random.normal(k1, (2, 4, 16, 16), dtype=jnp.float32)
    # Case 2: taller planes -> row-tiled path with periodic halo wrap,
    # grid = (2, 4) (forced by the minimum-grid-steps rule).
    x2 = jax.random.normal(k2, (1, 2, 32, 16), dtype=jnp.float32)

    J = 2
    for x in (x1, x2):
        coeffs = swt_forward(x, J=J)
        for c in coeffs:
            jax.block_until_ready(c)
        ref = swt_ref(x, J=J)
        N, C, H, W = x.shape
        for a, b in zip(coeffs, ref):
            assert a.shape == (N, C, 4, H, W), a.shape
            np.testing.assert_allclose(np.asarray(a), np.asarray(b),
                                       rtol=1e-5, atol=1e-5)

    print("KERNEL_OK")
</pallas_src>

<mosaic_0001>
module attributes {stable_mosaic.version = 11 : i64} {
  func.func @kernel(%arg0: i32, %arg1: i32, %arg2: memref<1x16x16xf32, #tpu.memory_space<vmem>>, %arg3: memref<1x8x16xf32, #tpu.memory_space<vmem>>, %arg4: memref<1x4x16x16xf32, #tpu.memory_space<vmem>>) attributes {dimension_semantics = [#tpu.dimension_semantics<parallel>, #tpu.dimension_semantics<parallel>], iteration_bounds = array<i64: 8, 1>, scalar_prefetch = 0 : i64, scratch_operands = 0 : i64, tpu.core_type = #tpu.core_type<tc>, window_params = [{transform_indices = @transform_0, window_bounds = array<i64: 1, 16, 16>}, {transform_indices = @transform_1, window_bounds = array<i64: 1, 8, 16>}, {transform_indices = @transform_2, window_bounds = array<i64: 1, 4, 16, 16>}]} {
    %c0 = arith.constant 0 : index
    %c0_0 = arith.constant 0 : index
    %c0_1 = arith.constant 0 : index
    %0 = vector.load %arg2[%c0, %c0_0, %c0_1] : memref<1x16x16xf32, #tpu.memory_space<vmem>>, vector<1x16x16xf32>
    %c0_2 = arith.constant 0 : index
    %c0_3 = arith.constant 0 : index
    %c0_4 = arith.constant 0 : index
    %1 = vector.load %arg3[%c0_2, %c0_3, %c0_4] : memref<1x8x16xf32, #tpu.memory_space<vmem>>, vector<1x8x16xf32>
    %2 = tpu.concatenate %0, %1 in 1 : vector<1x16x16xf32>, vector<1x8x16xf32> -> vector<1x24x16xf32>
    %cst = arith.constant 5.000000e-01 : f32
    %3 = vector.broadcast %cst : f32 to vector<1x24x16xf32>
    %4 = arith.mulf %2, %3 : vector<1x24x16xf32>
    %5 = vector.extract_strided_slice %4 {offsets = [0, 0, 1], sizes = [1, 24, 15], strides = [1, 1, 1]} : vector<1x24x16xf32> to vector<1x24x15xf32>
    %6 = vector.extract_strided_slice %4 {offsets = [0, 0, 0], sizes = [1, 24, 1], strides = [1, 1, 1]} : vector<1x24x16xf32> to vector<1x24x1xf32>
    %7 = tpu.concatenate %5, %6 in 2 : vector<1x24x15xf32>, vector<1x24x1xf32> -> vector<1x24x16xf32>
    %8 = arith.addf %4, %7 : vector<1x24x16xf32>
    %9 = vector.extract_strided_slice %8 {offsets = [0, 0, 0], sizes = [1, 16, 16], strides = [1, 1, 1]} : vector<1x24x16xf32> to vector<1x16x16xf32>
    %10 = vector.extract_strided_slice %8 {offsets = [0, 1, 0], sizes = [1, 16, 16], strides = [1, 1, 1]} : vector<1x24x16xf32> to vector<1x16x16xf32>
    %11 = arith.addf %9, %10 : vector<1x16x16xf32>
    %c0_5 = arith.constant 0 : index
    %c0_6 = arith.constant 0 : index
    %c0_7 = arith.constant 0 : index
    %c0_8 = arith.constant 0 : index
    %12 = vector.load %arg4[%c0_5, %c0_6, %c0_7, %c0_8] : memref<1x4x16x16xf32, #tpu.memory_space<vmem>>, vector<1x1x16x16xf32>
    %13 = vector.shape_cast %12 : vector<1x1x16x16xf32> to vector<1x16x16xf32>
    %14 = vector.shape_cast %11 : vector<1x16x16xf32> to vector<1x1x16x16xf32>
    tpu.vector_store %arg4[%c0_5, %c0_6, %c0_7, %c0_8], %14 {strides = array<i32>} : memref<1x4x16x16xf32, #tpu.memory_space<vmem>>, vector<1x1x16x16xf32>,
    %15 = arith.subf %9, %10 : vector<1x16x16xf32>
    %c0_9 = arith.constant 0 : index
    %c1 = arith.constant 1 : index
    %c0_10 = arith.constant 0 : index
    %c0_11 = arith.constant 0 : index
    %16 = vector.load %arg4[%c0_9, %c1, %c0_10, %c0_11] : memref<1x4x16x16xf32, #tpu.memory_space<vmem>>, vector<1x1x16x16xf32>
    %17 = vector.shape_cast %16 : vector<1x1x16x16xf32> to vector<1x16x16xf32>
    %18 = vector.shape_cast %15 : vector<1x16x16xf32> to vector<1x1x16x16xf32>
    tpu.vector_store %arg4[%c0_9, %c1, %c0_10, %c0_11], %18 {strides = array<i32>} : memref<1x4x16x16xf32, #tpu.memory_space<vmem>>, vector<1x1x16x16xf32>,
    %19 = arith.subf %4, %7 : vector<1x24x16xf32>
    %20 = vector.extract_strided_slice %19 {offsets = [0, 0, 0], sizes = [1, 16, 16], strides = [1, 1, 1]} : vector<1x24x16xf32> to vector<1x16x16xf32>
    %21 = vector.extract_strided_slice %19 {offsets = [0, 1, 0], sizes = [1, 16, 16], strides = [1, 1, 1]} : vector<1x24x16xf32> to vector<1x16x16xf32>
    %22 = arith.addf %20, %21 : vector<1x16x16xf32>
    %c0_12 = arith.constant 0 : index
    %c2 = arith.constant 2 : index
    %c0_13 = arith.constant 0 : index
    %c0_14 = arith.constant 0 : index
    %23 = vector.load %arg4[%c0_12, %c2, %c0_13, %c0_14] : memref<1x4x16x16xf32, #tpu.memory_space<vmem>>, vector<1x1x16x16xf32>
    %24 = vector.shape_cast %23 : vector<1x1x16x16xf32> to vector<1x16x16xf32>
    %25 = vector.shape_cast %22 : vector<1x16x16xf32> to vector<1x1x16x16xf32>
    tpu.vector_store %arg4[%c0_12, %c2, %c0_13, %c0_14], %25 {strides = array<i32>} : memref<1x4x16x16xf32, #tpu.memory_space<vmem>>, vector<1x1x16x16xf32>,
    %26 = arith.subf %20, %21 : vector<1x16x16xf32>
    %c0_15 = arith.constant 0 : index
    %c3 = arith.constant 3 : index
    %c0_16 = arith.constant 0 : index
    %c0_17 = arith.constant 0 : index
    %27 = vector.load %arg4[%c0_15, %c3, %c0_16, %c0_17] : memref<1x4x16x16xf32, #tpu.memory_space<vmem>>, vector<1x1x16x16xf32>
    %28 = vector.shape_cast %27 : vector<1x1x16x16xf32> to vector<1x16x16xf32>
    %29 = vector.shape_cast %26 : vector<1x16x16xf32> to vector<1x1x16x16xf32>
    tpu.vector_store %arg4[%c0_15, %c3, %c0_16, %c0_17], %29 {strides = array<i32>} : memref<1x4x16x16xf32, #tpu.memory_space<vmem>>, vector<1x1x16x16xf32>,
    return
  }
  func.func @transform_0(%arg0: i32, %arg1: i32) -> (i32, i32, i32) {
    %c0_i32 = arith.constant 0 : i32
    %c0_i32_0 = arith.constant 0 : i32
    return %arg0, %arg1, %c0_i32 : i32, i32, i32
  }
  func.func @transform_1(%arg0: i32, %arg1: i32) -> (i32, i32, i32) {
    %c1_i32 = arith.constant 1 : i32
    %0 = arith.addi %arg1, %c1_i32 : i32
    %c1_i32_0 = arith.constant 1 : i32
    %c0_i32 = arith.constant 0 : i32
    %1 = arith.cmpi eq, %c1_i32_0, %c0_i32 : i32
    %c1_i32_1 = arith.constant 1 : i32
    %2 = arith.select %1, %c1_i32_1, %c1_i32_0 : i32
    %3 = arith.remsi %0, %2 : i32
    %c0_i32_2 = arith.constant 0 : i32
    %4 = arith.cmpi ne, %3, %c0_i32_2 : i32
    %c0_i32_3 = arith.constant 0 : i32
    %5 = arith.cmpi slt, %3, %c0_i32_3 : i32
    %c0_i32_4 = arith.constant 0 : i32
    %6 = arith.cmpi slt, %2, %c0_i32_4 : i32
    %7 = arith.xori %5, %6 : i1
    %8 = arith.andi %7, %4 : i1
    %9 = arith.addi %3, %2 : i32
    %10 = arith.select %8, %9, %3 : i32
    %c2_i32 = arith.constant 2 : i32
    %11 = arith.muli %10, %c2_i32 : i32
    %c0_i32_5 = arith.constant 0 : i32
    %c0_i32_6 = arith.constant 0 : i32
    return %arg0, %11, %c0_i32_5 : i32, i32, i32
  }
  func.func @transform_2(%arg0: i32, %arg1: i32) -> (i32, i32, i32, i32) {
    %c0_i32 = arith.constant 0 : i32
    %c0_i32_0 = arith.constant 0 : i32
    %c0_i32_1 = arith.constant 0 : i32
    return %arg0, %c0_i32, %arg1, %c0_i32_0 : i32, i32, i32, i32
  }
}

</mosaic_0001>

<bundles_post_ra>
// kernel: tpu_custom_call.1
= control target key start
LH: loop header
LB: loop body
LE: loop exit
PB: predicated region body
PF: predicated region fallthrough
CT: control target
= control target key end

     0   :  { %7 = vsyncpa [#allocation3], 0  ;;  %s844_s0 = inlined_call_operand.hbm [shape: f32[8,16,16], index: 0, kind: input, shape index: {}]   ;;  %s845_s1 = inlined_call_operand.hbm [shape: f32[8,16,16], index: 1, kind: input, shape index: {}]   ;;  %s846_s2 = inlined_call_operand.hbm [shape: f32[8,4,16,16], index: 2, kind: output, shape index: {}]  }
   0x1   :  { %9 = vsyncpa [#allocation3 + $0x1], 0 }
   0x2   :  { %10 = vsyncpa [#allocation6], 0 }
   0x3   :  { %12 = vsyncpa [#allocation6 + $0x1], 0 }
   0x4   :  { %13 = vsyncpa [#allocation4], 0 }
   0x5   :  { %15 = vsyncpa [#allocation4 + $0x1], 0  ;;  %s700_s9 = smov 0   ;;  %s702_s10 = smov 0  }
   0x6   :  { %s704_s11 = smov 0   ;;  %s706_s12 = smov 0  }
   0x7   :  { %s708_s13 = smov 0   ;;  %s710_s14 = smov 0  }
   0x8 LB: > { %s430_s15 = sadd.s32 4294967295, %s677_s14   ;;  %s431_s16 = sadd.s32 4294967294, %s677_s14   ;;  %s677_s14 = sphi %s710_s14, %s21_s14   ;;  %s673_s13 = sphi %s708_s13, %s856_s13   ;;  %s669_s12 = sphi %s706_s12, %s855_s12   ;;  %s665_s11 = sphi %s704_s11, %s854_s11   ;;  %s661_s10 = sphi %s702_s10, %s853_s10   ;;  %s657_s9 = sphi %s700_s9, %s852_s9  }
   0x9   : > { %s33_s17 = sadd.s32 1, %s673_s13  ;;  %s42_s18 = sadd.s32 1, %s665_s11 }
   0xa   : > { %p35_p0 = scmp.ge.s32.totalorder %s33_s17, 8  ;;  %p49_p1 = scmp.ne.s32.totalorder %s665_s11, %s661_s10 }
   0xb   : > { %p50_p2 = scmp.eq.s32.totalorder %s677_s14, 0  ;;  %p55_p3 = scmp.ne.s32.totalorder %s661_s10, %s657_s9 }
   0xc   : > { %s858_s17 = smov (%p35_p0, %s33_s17), 0  ;;  %p56_p5 = scmp.eq.s32.totalorder %s430_s15, 0 }
   0xd   : > { %p741_p4 = por %p50_p2, %p49_p1  ;;  %s37_s20 = ssub.s32 %s673_s13, %s858_s17 }
   0xe   : > { %p107_p6 = scmp.eq.s32.totalorder %s430_s15, 7  ;;  %p40_p7 = scmp.eq.s32.totalorder %s37_s20, 0 }
   0xf   : > { %p747_p8 = por %p56_p5, %p55_p3  ;;  %p113_p10 = scmp.eq.s32.totalorder %s431_s16, 7 }
  0x10   : > { %p751_p9 = por %p107_p6, %p49_p1  ;;  %p475_p12 = scmp.lt.s32.totalorder %s677_s14, 8 }
  0x11   : > { %s756_s23 = scalar_select %p40_p7, %s665_s11, %s42_s18  }
  0x12   : > { %p758_p11 = por %p113_p10, %p55_p3  ;;  %s133_s25 = sand.u32 1, %s665_s11  }
  0x13   : > { %s434_s26 = sshll.u32 %s133_s25, 4  ;;  %s455_s27 = sshll.u32 %s673_s13, 4 }
  0x14   : > { %s144_s30 = scalar_lea.hbm %s844_s0, %s455_s27  ;;  %s137_s3 = scalar_lea.vmem [#allocation2], %s434_s26 }
  0x15   : > { %s147_s4 = sshll.u32 %s137_s3, 4  ;;  %s145_s5 = sshll.u32 %s144_s30, 4  ;;  %s148_s4 = int_to_ptr.vmem [resolvable:$true] %s147_s4  ;;  %s146_s5 = int_to_ptr.hbm [resolvable:$true] %s145_s5 }
  0x16   : > { %p770_p13 = pnand %p475_p12, %p741_p4  ;;  %p440_p0 = scmp.ge.s32.totalorder %s677_s14, 1 }
  0x17   : > { %s134_s7 = scalar_lea.sflag [#allocation3], %s133_s25  ;;  %s679_s8 = smov 128  }
  0x18   : > { %s680_s15 = smov 8   ;;  %p175_p1 = scmp.lt.s32.totalorder %s677_s14, 9 }
  0x19   : > { %467 = dma.hbm_to_vmem [thread:$0]  (!%p770_p13), %s146_s5, 256, %s148_s4, %s134_s7, %s679_s8, %s679_s8, %s680_s15  }
  0x1a   : > { %s437_s16 = sshll.u32 %s133_s25, 3  ;;  %s166_s26 = scalar_lea.hbm %s845_s1, %s455_s27 }
  0x1b   : > { %p176_p2 = pnand %p440_p0, %p175_p1  ;;  %s168_s19 = sshll.u32 %s166_s26, 4  ;;  %s169_s19 = int_to_ptr.hbm [resolvable:$true] %s168_s19 }
  0x1c   : > { %s161_s28 = scalar_lea.vmem [#allocation5], %s437_s16  ;;  %s158_s30 = scalar_lea.sflag [#allocation6], %s133_s25 }
  0x1d   : > { %s170_s29 = sshll.u32 %s161_s28, 4  ;;  %179 = sbr.rel (%p176_p2) target bundleno = 184 (0xb8), region = 28  ;;  %s171_s29 = int_to_ptr.vmem [resolvable:$true] %s170_s29 }
  0x1e   : > { %470 = dma.hbm_to_vmem [thread:$0]  (!%p770_p13), %s169_s19, 128, %s171_s29, %s158_s30  }
  0x1f   : > { %s784_s3 = sand.u32 (!%p176_p2), 1, %s661_s10  }
  0x20   : > { %s441_s4 = sshll.u32 (!%p176_p2), %s784_s3, 4  ;;  %s182_s5 = scalar_lea.sflag (!%p176_p2), [#allocation3], %s784_s3 }
  0x21   : > { %s185_s7 = scalar_lea.vmem (!%p176_p2), [#allocation2], %s441_s4 }
  0x22   : > { %644 = dma.done.wait (%p747_p8), %s182_s5, 256  }
  0x23   : > { %646 = vsyncadd (%p747_p8), %s182_s5, 4294967040  ;;  %s442_s25 = sshll.u32 %s784_s3, 3  ;;  %s192_s27 = scalar_lea.sflag [#allocation6], %s784_s3 }
  0x24   : > { %s195_s6 = scalar_lea.vmem [#allocation5], %s442_s25 }
  0x25   : > { %648 = dma.done.wait (%p747_p8), %s192_s27, 128  }
  0x26   : > { %650 = vsyncadd (%p747_p8), %s192_s27, 4294967168  ;;  %v226_v0 = vld [vmem:[%s195_s6] sm:$0xff]  ;;  %v225_v2 = vld [vmem:[%s185_s7 + $0x8] sm:$0xff]  ;;  %s681_s8 = smov 127   ;;  %s682_s15 = smov 15   ;;  %vm251_vm0 = vcmask 121856  }
  0x27   : > { %v224_v1 = vld [vmem:[%s185_s7] sm:$0xff]  ;;  %v229_v3 = vmul.f32 0.5, %v226_v0  ;;  %v228_v5 = vmul.f32 0.5, %v225_v2  ;;  %s443_s21 = sshll.u32 %s784_s3, 6  ;;  %vm261_vm1 = vcmask 1046528   ;;  %s457_s16 = sshll.u32 %s669_s12, 6 }
  0x28   : > { %v227_v4 = vmul.f32 0.5, %v224_v1  ;;  %vm271_vm2 = vcmask 130048   ;;  %s316_s26 = scalar_lea.hbm %s846_s2, %s457_s16  ;;  %s221_s19 = scalar_lea.vmem [#allocation7], %s443_s21 }
  0x29   : > { %237 = vrot.lane.b32.xlu1 %v229_v3, %s681_s8  ;;  %244 = vrot.lane.b32.xlu2 %v228_v5, %s682_s15  ;;  %s317_s12 = sshll.u32 %s221_s19, 4  ;;  %s319_s28 = sshll.u32 %s316_s26, 4  ;;  %s318_s12 = int_to_ptr.vmem [resolvable:$true] %s317_s12  ;;  %s320_s28 = int_to_ptr.hbm [resolvable:$true] %s319_s28 }
  0x2a   : > { %233 = vrot.lane.b32.xlu0 %v227_v4, %s681_s8  ;;  %s303_s29 = scalar_lea.sflag [#allocation4], %s784_s3  ;;  %s605_s30 = sshra.s32 %s320_s28, 4  ;;  %s606_s30 = int_to_ptr.hbm [resolvable:$true] %s605_s30 }
  0x2b   : > { %s607_s4 = scalar_lea.hbm %s606_s30, 64  ;;  %s611_s25 = scalar_lea.hbm %s846_s2, 512 }
  0x2c   : > { %p608_p3 = scmp.ne.s32.totalorder %s606_s30, %s607_s4  ;;  %p612_p6 = scmp.lt.s32.totalorder %s606_s30, %s846_s2 }
  0x2d   : > { %p613_p7 = scmp.lt.s32.totalorder %s611_s25, %s607_s4 }
  0x2e   : > { %p609_p4 = pnand %p608_p3, %p751_p9 }
  0x2f   : > { %p614_p8 = por %p613_p7, %p612_p6 }
  0x30   : > { %p610_p5 = pneg %p609_p4 }
  0x31   : > { %242 = vrot.lane.b32.xlu1 %v227_v4, %s682_s15  ;;  %246 = vrot.lane.b32.xlu2 %v229_v3, %s682_s15 }
  0x32   : > { %235 = vrot.lane.b32.xlu0 %v228_v5, %s681_s8  ;;  %p615_p10 = pnand %p614_p8, %p610_p5 }
  0x83   : > { %v245_v6 = vpop.permute.xlu2 %244 }
  0x8b   : > { %v247_v9 = vpop.permute.xlu2 %246 }
  0x9b   : > { %v238_v7 = vpop.permute.xlu1 %237 }
  0x9c   : > { %v234_v8 = vpop.permute.xlu0 %233  ;;  %v254_v10 = vsel %vm251_vm0, %v238_v7, %v247_v9 }
  0x9d   : > { %v257_v11 = vadd.f32 %v254_v10, %v229_v3  ;;  %v281_v14 = vsub.f32 %v229_v3, %v254_v10 }
  0x9f   : > { %v265_v21 = vrot.slane %v257_v11, 1  ;;  %v288_v26 = vrot.slane %v281_v14, 1 }
  0xa3   : > { %v243_v12 = vpop.permute.xlu1 %242 }
  0xa4   : > { %v236_v13 = vpop.permute.xlu0 %235  ;;  %v252_v15 = vsel %vm251_vm0, %v234_v8, %v243_v12 }
  0xa5   : > { %v253_v16 = vsel %vm251_vm0, %v236_v13, %v245_v6  ;;  %v255_v17 = vadd.f32 %v252_v15, %v227_v4  ;;  %v279_v18 = vsub.f32 %v227_v4, %v252_v15 }
  0xa6   : > { %v256_v19 = vadd.f32 %v253_v16, %v228_v5  ;;  %v280_v20 = vsub.f32 %v228_v5, %v253_v16 }
  0xa7   : > { %v262_v22 = vrot.slane %v255_v17, 1  ;;  %v285_v23 = vrot.slane %v279_v18, 1 }
  0xa8   : > { %v263_v24 = vrot.slane %v256_v19, 1  ;;  %v286_v25 = vrot.slane %v280_v20, 1 }
  0xaa   : > { %v264_v27 = vsel %vm261_vm1, %v262_v22, %v263_v24  ;;  %v266_v28 = vsel %vm261_vm1, %v263_v24, %v265_v21  ;;  %v287_v29 = vsel %vm261_vm1, %v285_v23, %v286_v25  ;;  %v289_v33 = vsel %vm261_vm1, %v286_v25, %v288_v26 }
  0xab   : > { %v269_v30 = vadd.f32 %v264_v27, %v255_v17  ;;  %v270_v31 = vadd.f32 %v266_v28, %v256_v19  ;;  %v274_v32 = vsub.f32 %v255_v17, %v264_v27  ;;  %v275_v34 = vsub.f32 %v256_v19, %v266_v28 }
  0xac   : > { %v292_v35 = vadd.f32 %v287_v29, %v279_v18  ;;  %v293_v36 = vadd.f32 %v289_v33, %v280_v20  ;;  %v297_v37 = vsub.f32 %v279_v18, %v287_v29  ;;  %v298_v38 = vsub.f32 %v280_v20, %v289_v33 }
  0xad   : > { %272 = vst.msk [vmem:[%s221_s19] sm:$0xff] %vm271_vm2, %v269_v30 }
  0xae   : > { %273 = vst.msk [vmem:[%s221_s19 + $0x8] sm:$0xff] %vm271_vm2, %v270_v31 }
  0xaf   : > { %444 = vst.msk [vmem:[%s221_s19 + $0x10] sm:$0xff] %vm271_vm2, %v274_v32 }
  0xb0   : > { %445 = vst.msk [vmem:[%s221_s19 + $0x18] sm:$0xff] %vm271_vm2, %v275_v34 }
  0xb1   : > { %446 = vst.msk [vmem:[%s221_s19 + $0x20] sm:$0xff] %vm271_vm2, %v292_v35 }
  0xb2   : > { %447 = vst.msk [vmem:[%s221_s19 + $0x28] sm:$0xff] %vm271_vm2, %v293_v36 }
  0xb3   : > { %448 = vst.msk [vmem:[%s221_s19 + $0x30] sm:$0xff] %vm271_vm2, %v297_v37 }
  0xb4   : > { %449 = vst.msk [vmem:[%s221_s19 + $0x38] sm:$0xff] %vm271_vm2, %v298_v38 }
  0xb5   : > { %618 = shalt.err (!%p615_p10)
}
  0xb6   : > { %s683_s3 = smov 128   ;;  %s684_s8 = smov 8  }
  0xb7   : > { %462 = dma.vmem_to_hbm [thread:$0]  (%p751_p9), %s318_s12, 1024, %s320_s28, %s303_s29, %s683_s3, %s683_s3, %s684_s8  }
  0xb8 PF: > { %p476_p12 = scmp.ge.s32.totalorder %s677_s14, 2  ;;  %s334_s15 = sand.u32 1, %s657_s9  }
  0xb9   : > { %s335_s21 = scalar_lea.sflag [#allocation4], %s334_s15 }
  0xba   : > { %p472_p13 = pnand %p476_p12, %p758_p11 }
  0xbc   : > { %p473_p0 = pneg %p472_p13 }
  0xbe   : > { %652 = dma.done.wait (%p473_p0), %s335_s21, 1024  }
  0xbf   : > { %654 = vsyncadd (%p473_p0), %s335_s21, 4294966272  ;;  %s21_s14 = sadd.s32 1, %s677_s14   ;;  %s852_s9 = smov %s661_s10 }
  0xc0   : > { %p18_p1 = scmp.ge.s32.totalorder %s21_s14, 10   ;;  %s853_s10 = smov %s665_s11 }
  0xc1   : > { %s854_s11 = smov %s756_s23  ;;  %s855_s12 = smov %s673_s13 }
  0xc2   : > { %s856_s13 = smov %s858_s17  ;;  %20 = sbr.rel (!%p18_p1) target bundleno = 8 (0x8), region = 89 }
  0xc7   :  { %341 = vsyncpa [#allocation3], 1 }
  0xc8   :  { %343 = vsyncpa [#allocation3 + $0x1], 1 }
  0xc9   :  { %344 = vsyncpa [#allocation6], 1 }
  0xca   :  { %346 = vsyncpa [#allocation6 + $0x1], 1 }
  0xcb   :  { %347 = vsyncpa [#allocation4], 1 }
  0xcc   :  { %349 = vsyncpa [#allocation4 + $0x1], 1 }

</bundles_post_ra>
